<compile_context>
chip_gen: v5e
topology: v5e:2x2
jax: 0.10.0
libtpu: 0.0.40
codegen_flags: <defaults>
</compile_context>

<pallas_src>
import functools

import jax
import jax.numpy as jnp
from jax.experimental import pallas as pl
from jax.experimental.pallas import tpu as pltpu

_LANE = 128
_SUBLANE = 8


def _round_up(x, m):
    return ((x + m - 1) // m) * m


def _vmem_budget_bytes():
    """Per-generation VMEM budget: 75% of physical VMEM, leaving compiler headroom."""
    try:
        cap = int(pltpu.get_tpu_info().vmem_capacity_bytes)
    except Exception:
        cap = 64 * 2 ** 20  # conservative default = v7x per-core VMEM
    return (cap * 3) // 4


def _choose_tm(M, Din, Hp, Dout, in_bytes, out_bytes, budget, weight_bufs):
    """Largest row tile that fits the VMEM budget (multiple of 8), with >=2 grid steps
    when the token count allows it (v7x has 2 TensorCores on the 'parallel' axis)."""
    resident = weight_bufs * (Din * Hp * 2 + Hp * Dout * 2 + Hp * 4 + Dout * 4)
    per_row = (2 * Din * in_bytes        # double-buffered x tile
               + 2 * Dout * out_bytes    # double-buffered out tile
               + Hp * 4 + Hp * 2         # f32 hidden intermediate + bf16 copy for fc2
               + Din * 2 + Dout * 4)     # in-kernel bf16 x cast + f32 pre-cast output
    avail = budget - resident - (4 << 20)  # fixed headroom for compiler scratch
    if avail < per_row * _SUBLANE:
        # Weights alone (nearly) fill the budget; degrade gracefully to the smallest legal
        # tile. For very large H the better fix is to chunk Hp with an f32 accumulator
        # over an extra "arbitrary" grid axis.
        return _SUBLANE
    tm_max = min(1024, (avail // per_row) // _SUBLANE * _SUBLANE)
    if M >= 2 * _SUBLANE:
        tm = min(tm_max, _round_up((M + 1) // 2, _SUBLANE))  # >=2 parallel grid steps
    else:
        tm = min(tm_max, _round_up(M, _SUBLANE))
    return max(_SUBLANE, tm)


def _mlp_kernel(x_ref, w1_ref, b1_ref, w2_ref, b2_ref, o_ref, *, approx_gelu):
    # fc1: cast the activation tile to bf16 in-kernel and hit the MXU with bf16 operands,
    # f32 accumulation.
    x = x_ref[...].astype(jnp.bfloat16)
    h = jnp.dot(x, w1_ref[...], preferred_element_type=jnp.float32)
    h = h + b1_ref[...]                           # bias add in f32
    h = jax.nn.gelu(h, approximate=approx_gelu)   # tanh -> EUP slot; erf -> VALU polynomial
    # dropout(p=0.0) is the identity -> omitted.
    o = jnp.dot(h.astype(w2_ref.dtype), w2_ref[...], preferred_element_type=jnp.float32)
    o_ref[...] = (o + b2_ref[...]).astype(o_ref.dtype)


def prepare_mlp_params(w1, b1, w2, b2):
    """One-time weight prep (hoisted out of the per-call path): pad the hidden dim to a
    multiple of 128 lanes and cast the matmul operands to bf16."""
    Din, H = w1.shape
    Dout = w2.shape[1]
    Hp = _round_up(H, _LANE)
    w1_p = jnp.zeros((Din, Hp), jnp.bfloat16).at[:, :H].set(w1.astype(jnp.bfloat16))
    b1_p = jnp.zeros((1, Hp), jnp.float32).at[:, :H].set(b1.astype(jnp.float32)[None, :])
    w2_p = jnp.zeros((Hp, Dout), jnp.bfloat16).at[:H, :].set(w2.astype(jnp.bfloat16))
    b2_p = b2.astype(jnp.float32).reshape(1, Dout)
    return {"w1": w1_p, "b1": b1_p, "w2": w2_p, "b2": b2_p}


def mlp_forward(x, params, *, approx_gelu=True, tm=None, single_buffer_weights=True):
    """x: (..., Din); params from prepare_mlp_params. Returns (..., Dout)."""
    w1, b1, w2, b2 = params["w1"], params["b1"], params["w2"], params["b2"]
    Din, Hp = w1.shape
    Dout = w2.shape[1]

    orig_shape = x.shape
    assert orig_shape[-1] == Din, "last dim of x must equal in_features"
    x2d = x.reshape(-1, Din)           # no padding / casting of activations in HBM
    M = x2d.shape[0]
    out_dtype = x.dtype
    in_bytes = jnp.dtype(x2d.dtype).itemsize
    out_bytes = jnp.dtype(out_dtype).itemsize

    budget = _vmem_budget_bytes()
    weight_bufs = 1 if single_buffer_weights else 2
    if tm is None:
        tm = _choose_tm(M, Din, Hp, Dout, in_bytes, out_bytes, budget, weight_bufs)
    grid = (pl.cdiv(M, tm),)

    resident_kwargs = (
        dict(pipeline_mode=pl.Buffered(1)) if single_buffer_weights else {}
    )
    in_specs = [
        pl.BlockSpec((tm, Din), lambda i: (i, 0)),                       # x tile (pipelined)
        pl.BlockSpec((Din, Hp), lambda i: (0, 0), **resident_kwargs),    # w1 (resident)
        pl.BlockSpec((1, Hp), lambda i: (0, 0), **resident_kwargs),      # b1 (resident)
        pl.BlockSpec((Hp, Dout), lambda i: (0, 0), **resident_kwargs),   # w2 (resident)
        pl.BlockSpec((1, Dout), lambda i: (0, 0), **resident_kwargs),    # b2 (resident)
    ]
    out_specs = pl.BlockSpec((tm, Dout), lambda i: (i, 0))               # true-shape output

    # VMEM accounting (weights single- or double-buffered, x/out double-buffered,
    # f32 hidden intermediate + bf16 copies).
    vmem_needed = (
        weight_bufs * (w1.size * 2 + w2.size * 2 + b1.size * 4 + b2.size * 4)
        + 2 * (tm * Din * in_bytes + tm * Dout * out_bytes)
        + tm * Hp * 6 + tm * Din * 2 + tm * Dout * 4
    )
    vmem_limit = int(min(budget, max(int(1.5 * vmem_needed), 32 * 2 ** 20)))

    flops = 2 * M * (Din * Hp + Hp * Dout)
    bytes_accessed = (M * Din * in_bytes + w1.size * 2 + w2.size * 2
                      + (b1.size + b2.size) * 4 + M * Dout * out_bytes)
    cost = pl.CostEstimate(flops=int(flops), transcendentals=int(M * Hp),
                           bytes_accessed=int(bytes_accessed))

    out = pl.pallas_call(
        functools.partial(_mlp_kernel, approx_gelu=approx_gelu),
        out_shape=jax.ShapeDtypeStruct((M, Dout), out_dtype),
        grid_spec=pl.GridSpec(grid=grid, in_specs=in_specs, out_specs=out_specs),
        compiler_params=pltpu.CompilerParams(
            dimension_semantics=("parallel",),
            vmem_limit_bytes=vmem_limit,
        ),
        cost_estimate=cost,
    )(x2d, w1, b1, w2, b2)

    return out.reshape(*orig_shape[:-1], Dout)


if __name__ == "__main__":
    # Module config: in_features=32, hidden_features=64, out_features=32, drop=0.0
    B, N, Din, H, Dout = 2, 8, 32, 64, 32

    key = jax.random.PRNGKey(0)
    kx, kw1, kb1, kw2, kb2 = jax.random.split(key, 5)

    x = jax.random.normal(kx, (B, N, Din), dtype=jnp.float32)

    # Deterministic PyTorch-Linear-style init: U(-1/sqrt(fan_in), 1/sqrt(fan_in))
    lim1 = 1.0 / (Din ** 0.5)
    lim2 = 1.0 / (H ** 0.5)
    w1 = jax.random.uniform(kw1, (Din, H), minval=-lim1, maxval=lim1, dtype=jnp.float32)
    b1 = jax.random.uniform(kb1, (H,), minval=-lim1, maxval=lim1, dtype=jnp.float32)
    w2 = jax.random.uniform(kw2, (H, Dout), minval=-lim2, maxval=lim2, dtype=jnp.float32)
    b2 = jax.random.uniform(kb2, (Dout,), minval=-lim2, maxval=lim2, dtype=jnp.float32)

    # One-time weight prep (pad/cast), hoisted out of the per-call path.
    params = prepare_mlp_params(w1, b1, w2, b2)

    try:
        fwd = jax.jit(functools.partial(mlp_forward, single_buffer_weights=True))
        out = jax.block_until_ready(fwd(x, params))
    except Exception:
        # Fallback for JAX builds where pl.Buffered isn't honored by pallas_call specs:
        # identical kernel, default double-buffered weights.
        fwd = jax.jit(functools.partial(mlp_forward, single_buffer_weights=False))
        out = jax.block_until_ready(fwd(x, params))

    # Reference: all-f32 fc1 -> exact erf GELU (torch.nn.GELU default) -> fc2.
    ref = jax.nn.gelu(x.reshape(-1, Din) @ w1 + b1, approximate=False) @ w2 + b2
    ref = ref.reshape(B, N, Dout)

    assert out.shape == (B, N, Dout)
    # bf16 MXU operands (f32 accumulation) + tanh-GELU vs an all-f32 erf reference.
    assert jnp.allclose(out, ref, atol=5e-2, rtol=5e-2), "mismatch vs reference"

    print("KERNEL_OK")
</pallas_src>

<mosaic_0001>
module attributes {stable_mosaic.version = 11 : i64} {
  func.func @_mlp_kernel(%arg0: i32, %arg1: memref<8x32xf32, #tpu.memory_space<vmem>>, %arg2: memref<32x128xbf16, #tpu.memory_space<vmem>>, %arg3: memref<1x128xf32, #tpu.memory_space<vmem>>, %arg4: memref<128x32xbf16, #tpu.memory_space<vmem>>, %arg5: memref<1x32xf32, #tpu.memory_space<vmem>>, %arg6: memref<8x32xf32, #tpu.memory_space<vmem>>) attributes {dimension_semantics = [#tpu.dimension_semantics<parallel>], iteration_bounds = array<i64: 2>, scalar_prefetch = 0 : i64, scratch_operands = 0 : i64, tpu.core_type = #tpu.core_type<tc>, window_params = [{transform_indices = @transform_0, window_bounds = array<i64: 8, 32>}, {pipeline_mode = #tpu.pipeline_mode<synchronous>, transform_indices = @transform_1, window_bounds = array<i64: 32, 128>}, {pipeline_mode = #tpu.pipeline_mode<synchronous>, transform_indices = @transform_2, window_bounds = array<i64: 1, 128>}, {pipeline_mode = #tpu.pipeline_mode<synchronous>, transform_indices = @transform_3, window_bounds = array<i64: 128, 32>}, {pipeline_mode = #tpu.pipeline_mode<synchronous>, transform_indices = @transform_4, window_bounds = array<i64: 1, 32>}, {transform_indices = @transform_5, window_bounds = array<i64: 8, 32>}]} {
    %c0 = arith.constant 0 : index
    %c0_0 = arith.constant 0 : index
    %0 = vector.load %arg1[%c0, %c0_0] : memref<8x32xf32, #tpu.memory_space<vmem>>, vector<8x32xf32>
    %1 = arith.truncf %0 : vector<8x32xf32> to vector<8x32xbf16>
    %c0_1 = arith.constant 0 : index
    %c0_2 = arith.constant 0 : index
    %2 = vector.load %arg2[%c0_1, %c0_2] : memref<32x128xbf16, #tpu.memory_space<vmem>>, vector<32x128xbf16>
    %cst = arith.constant dense<0.000000e+00> : vector<8x128xf32>
    %3 = tpu.matmul %1, %2, %cst {dimension_numbers = #tpu.dot_dimension_numbers<[1], [0], [0], [1], [0, 0, 1, 1], [], []>} : vector<8x32xbf16>, vector<32x128xbf16>, vector<8x128xf32> -> vector<8x128xf32>
    %c0_3 = arith.constant 0 : index
    %c0_4 = arith.constant 0 : index
    %4 = vector.load %arg3[%c0_3, %c0_4] : memref<1x128xf32, #tpu.memory_space<vmem>>, vector<1x128xf32>
    %5 = vector.broadcast %4 : vector<1x128xf32> to vector<8x128xf32>
    %6 = arith.addf %3, %5 : vector<8x128xf32>
    %7 = arith.mulf %6, %6 : vector<8x128xf32>
    %8 = arith.mulf %6, %7 : vector<8x128xf32>
    %cst_5 = arith.constant 4.471500e-02 : f32
    %9 = vector.broadcast %cst_5 : f32 to vector<8x128xf32>
    %10 = arith.mulf %9, %8 : vector<8x128xf32>
    %11 = arith.addf %6, %10 : vector<8x128xf32>
    %cst_6 = arith.constant 0.797884583 : f32
    %12 = vector.broadcast %cst_6 : f32 to vector<8x128xf32>
    %13 = arith.mulf %12, %11 : vector<8x128xf32>
    %14 = math.tanh %13 : vector<8x128xf32>
    %cst_7 = arith.constant 1.000000e+00 : f32
    %15 = vector.broadcast %cst_7 : f32 to vector<8x128xf32>
    %16 = arith.addf %15, %14 : vector<8x128xf32>
    %cst_8 = arith.constant 5.000000e-01 : f32
    %17 = vector.broadcast %cst_8 : f32 to vector<8x128xf32>
    %18 = arith.mulf %17, %16 : vector<8x128xf32>
    %19 = arith.mulf %6, %18 : vector<8x128xf32>
    %20 = arith.truncf %19 : vector<8x128xf32> to vector<8x128xbf16>
    %c0_9 = arith.constant 0 : index
    %c0_10 = arith.constant 0 : index
    %21 = vector.load %arg4[%c0_9, %c0_10] : memref<128x32xbf16, #tpu.memory_space<vmem>>, vector<128x32xbf16>
    %cst_11 = arith.constant dense<0.000000e+00> : vector<8x32xf32>
    %22 = tpu.matmul %20, %21, %cst_11 {dimension_numbers = #tpu.dot_dimension_numbers<[1], [0], [0], [1], [0, 0, 1, 1], [], []>} : vector<8x128xbf16>, vector<128x32xbf16>, vector<8x32xf32> -> vector<8x32xf32>
    %c0_12 = arith.constant 0 : index
    %c0_13 = arith.constant 0 : index
    %23 = vector.load %arg5[%c0_12, %c0_13] : memref<1x32xf32, #tpu.memory_space<vmem>>, vector<1x32xf32>
    %24 = vector.broadcast %23 : vector<1x32xf32> to vector<8x32xf32>
    %25 = arith.addf %22, %24 : vector<8x32xf32>
    %c0_14 = arith.constant 0 : index
    %c0_15 = arith.constant 0 : index
    %26 = vector.load %arg6[%c0_14, %c0_15] : memref<8x32xf32, #tpu.memory_space<vmem>>, vector<8x32xf32>
    tpu.vector_store %arg6[%c0_14, %c0_15], %25 {strides = array<i32>} : memref<8x32xf32, #tpu.memory_space<vmem>>, vector<8x32xf32>,
    return
  }
  func.func @transform_0(%arg0: i32) -> (i32, i32) {
    %c0_i32 = arith.constant 0 : i32
    %c0_i32_0 = arith.constant 0 : i32
    return %arg0, %c0_i32 : i32, i32
  }
  func.func @transform_1(%arg0: i32) -> (i32, i32) {
    %c0_i32 = arith.constant 0 : i32
    %c0_i32_0 = arith.constant 0 : i32
    %c0_i32_1 = arith.constant 0 : i32
    return %c0_i32, %c0_i32_0 : i32, i32
  }
  func.func @transform_2(%arg0: i32) -> (i32, i32) {
    %c0_i32 = arith.constant 0 : i32
    %c0_i32_0 = arith.constant 0 : i32
    %c0_i32_1 = arith.constant 0 : i32
    return %c0_i32, %c0_i32_0 : i32, i32
  }
  func.func @transform_3(%arg0: i32) -> (i32, i32) {
    %c0_i32 = arith.constant 0 : i32
    %c0_i32_0 = arith.constant 0 : i32
    %c0_i32_1 = arith.constant 0 : i32
    return %c0_i32, %c0_i32_0 : i32, i32
  }
  func.func @transform_4(%arg0: i32) -> (i32, i32) {
    %c0_i32 = arith.constant 0 : i32
    %c0_i32_0 = arith.constant 0 : i32
    %c0_i32_1 = arith.constant 0 : i32
    return %c0_i32, %c0_i32_0 : i32, i32
  }
  func.func @transform_5(%arg0: i32) -> (i32, i32) {
    %c0_i32 = arith.constant 0 : i32
    %c0_i32_0 = arith.constant 0 : i32
    return %arg0, %c0_i32 : i32, i32
  }
}

module attributes {stable_mosaic.version = 11 : i64} {
  func.func @_mlp_kernel(%arg0: i32, %arg1: memref<8x32xf32, #tpu.memory_space<vmem>>, %arg2: memref<32x128xbf16, #tpu.memory_space<vmem>>, %arg3: memref<1x128xf32, #tpu.memory_space<vmem>>, %arg4: memref<128x32xbf16, #tpu.memory_space<vmem>>, %arg5: memref<1x32xf32, #tpu.memory_space<vmem>>, %arg6: memref<8x32xf32, #tpu.memory_space<vmem>>) attributes {dimension_semantics = [#tpu.dimension_semantics<parallel>], iteration_bounds = array<i64: 2>, scalar_prefetch = 0 : i64, scratch_operands = 0 : i64, tpu.core_type = #tpu.core_type<tc>, window_params = [{transform_indices = @transform_0, window_bounds = array<i64: 8, 32>}, {pipeline_mode = #tpu.pipeline_mode<synchronous>, transform_indices = @transform_1, window_bounds = array<i64: 32, 128>}, {pipeline_mode = #tpu.pipeline_mode<synchronous>, transform_indices = @transform_2, window_bounds = array<i64: 1, 128>}, {pipeline_mode = #tpu.pipeline_mode<synchronous>, transform_indices = @transform_3, window_bounds = array<i64: 128, 32>}, {pipeline_mode = #tpu.pipeline_mode<synchronous>, transform_indices = @transform_4, window_bounds = array<i64: 1, 32>}, {transform_indices = @transform_5, window_bounds = array<i64: 8, 32>}]} {
    %c0 = arith.constant 0 : index
    %c0_0 = arith.constant 0 : index
    %0 = vector.load %arg1[%c0, %c0_0] : memref<8x32xf32, #tpu.memory_space<vmem>>, vector<8x32xf32>
    %1 = arith.truncf %0 : vector<8x32xf32> to vector<8x32xbf16>
    %c0_1 = arith.constant 0 : index
    %c0_2 = arith.constant 0 : index
    %2 = vector.load %arg2[%c0_1, %c0_2] : memref<32x128xbf16, #tpu.memory_space<vmem>>, vector<32x128xbf16>
    %cst = arith.constant dense<0.000000e+00> : vector<8x128xf32>
    %3 = tpu.matmul %1, %2, %cst {dimension_numbers = #tpu.dot_dimension_numbers<[1], [0], [0], [1], [0, 0, 1, 1], [], []>} : vector<8x32xbf16>, vector<32x128xbf16>, vector<8x128xf32> -> vector<8x128xf32>
    %c0_3 = arith.constant 0 : index
    %c0_4 = arith.constant 0 : index
    %4 = vector.load %arg3[%c0_3, %c0_4] : memref<1x128xf32, #tpu.memory_space<vmem>>, vector<1x128xf32>
    %5 = vector.broadcast %4 : vector<1x128xf32> to vector<8x128xf32>
    %6 = arith.addf %3, %5 : vector<8x128xf32>
    %7 = arith.mulf %6, %6 : vector<8x128xf32>
    %8 = arith.mulf %6, %7 : vector<8x128xf32>
    %cst_5 = arith.constant 4.471500e-02 : f32
    %9 = vector.broadcast %cst_5 : f32 to vector<8x128xf32>
    %10 = arith.mulf %9, %8 : vector<8x128xf32>
    %11 = arith.addf %6, %10 : vector<8x128xf32>
    %cst_6 = arith.constant 0.797884583 : f32
    %12 = vector.broadcast %cst_6 : f32 to vector<8x128xf32>
    %13 = arith.mulf %12, %11 : vector<8x128xf32>
    %14 = math.tanh %13 : vector<8x128xf32>
    %cst_7 = arith.constant 1.000000e+00 : f32
    %15 = vector.broadcast %cst_7 : f32 to vector<8x128xf32>
    %16 = arith.addf %15, %14 : vector<8x128xf32>
    %cst_8 = arith.constant 5.000000e-01 : f32
    %17 = vector.broadcast %cst_8 : f32 to vector<8x128xf32>
    %18 = arith.mulf %17, %16 : vector<8x128xf32>
    %19 = arith.mulf %6, %18 : vector<8x128xf32>
    %20 = arith.truncf %19 : vector<8x128xf32> to vector<8x128xbf16>
    %c0_9 = arith.constant 0 : index
    %c0_10 = arith.constant 0 : index
    %21 = vector.load %arg4[%c0_9, %c0_10] : memref<128x32xbf16, #tpu.memory_space<vmem>>, vector<128x32xbf16>
    %cst_11 = arith.constant dense<0.000000e+00> : vector<8x32xf32>
    %22 = tpu.matmul %20, %21, %cst_11 {dimension_numbers = #tpu.dot_dimension_numbers<[1], [0], [0], [1], [0, 0, 1, 1], [], []>} : vector<8x128xbf16>, vector<128x32xbf16>, vector<8x32xf32> -> vector<8x32xf32>
    %c0_12 = arith.constant 0 : index
    %c0_13 = arith.constant 0 : index
    %23 = vector.load %arg5[%c0_12, %c0_13] : memref<1x32xf32, #tpu.memory_space<vmem>>, vector<1x32xf32>
    %24 = vector.broadcast %23 : vector<1x32xf32> to vector<8x32xf32>
    %25 = arith.addf %22, %24 : vector<8x32xf32>
    %c0_14 = arith.constant 0 : index
    %c0_15 = arith.constant 0 : index
    %26 = vector.load %arg6[%c0_14, %c0_15] : memref<8x32xf32, #tpu.memory_space<vmem>>, vector<8x32xf32>
    tpu.vector_store %arg6[%c0_14, %c0_15], %25 {strides = array<i32>} : memref<8x32xf32, #tpu.memory_space<vmem>>, vector<8x32xf32>,
    return
  }
  func.func @transform_0(%arg0: i32) -> (i32, i32) {
    %c0_i32 = arith.constant 0 : i32
    %c0_i32_0 = arith.constant 0 : i32
    return %arg0, %c0_i32 : i32, i32
  }
  func.func @transform_1(%arg0: i32) -> (i32, i32) {
    %c0_i32 = arith.constant 0 : i32
    %c0_i32_0 = arith.constant 0 : i32
    %c0_i32_1 = arith.constant 0 : i32
    return %c0_i32, %c0_i32_0 : i32, i32
  }
  func.func @transform_2(%arg0: i32) -> (i32, i32) {
    %c0_i32 = arith.constant 0 : i32
    %c0_i32_0 = arith.constant 0 : i32
    %c0_i32_1 = arith.constant 0 : i32
    return %c0_i32, %c0_i32_0 : i32, i32
  }
  func.func @transform_3(%arg0: i32) -> (i32, i32) {
    %c0_i32 = arith.constant 0 : i32
    %c0_i32_0 = arith.constant 0 : i32
    %c0_i32_1 = arith.constant 0 : i32
    return %c0_i32, %c0_i32_0 : i32, i32
  }
  func.func @transform_4(%arg0: i32) -> (i32, i32) {
    %c0_i32 = arith.constant 0 : i32
    %c0_i32_0 = arith.constant 0 : i32
    %c0_i32_1 = arith.constant 0 : i32
    return %c0_i32, %c0_i32_0 : i32, i32
  }
  func.func @transform_5(%arg0: i32) -> (i32, i32) {
    %c0_i32 = arith.constant 0 : i32
    %c0_i32_0 = arith.constant 0 : i32
    return %arg0, %c0_i32 : i32, i32
  }
}

</mosaic_0001>

<bundles_post_ra>
// kernel: mlp_forward.1
= control target key start
LH: loop header
LB: loop body
LE: loop exit
PB: predicated region body
PF: predicated region fallthrough
CT: control target
= control target key end

     0   :  { %10 = vsyncpa [#allocation3], 0  ;;  %s748_s0 = inlined_call_operand.vmem [shape: f32[16,32], index: 0, kind: input, shape index: {}]   ;;  %s749_s1 = inlined_call_operand.vmem [shape: bf16[32,128], index: 1, kind: input, shape index: {}]   ;;  %s750_s2 = inlined_call_operand.vmem [shape: f32[1,128], index: 2, kind: input, shape index: {}]   ;;  %s751_s3 = inlined_call_operand.vmem [shape: bf16[128,32], index: 3, kind: input, shape index: {}]   ;;  %s752_s4 = inlined_call_operand.vmem [shape: f32[1,32], index: 4, kind: input, shape index: {}]   ;;  %s753_s5 = inlined_call_operand.hbm [shape: f32[16,32], index: 5, kind: output, shape index: {}]  }
   0x1   :  { %12 = vsyncpa [#allocation3 + $0x1], 0  ;;  %s625_s18 = smov 0   ;;  %s627_s19 = smov 0  }
   0x2   :  { %s629_s20 = smov 0   ;;  %s631_s21 = smov 0  }
   0x3 LB: > { %s646_s22 = sadd.s32 4294967295, %s593_s21   ;;  %s427_s23 = sadd.s32 4294967294, %s593_s21   ;;  %s593_s21 = sphi %s631_s21, %s759_s21   ;;  %s589_s20 = sphi %s629_s20, %s758_s20   ;;  %s585_s19 = sphi %s627_s19, %s757_s19   ;;  %s581_s18 = sphi %s625_s18, %s756_s18  }
   0x4   : > { %s650_s24 = sadd.s32 1, %s593_s21   ;;  %s135_s25 = sadd.s32 1, %s589_s20 }
   0x5   : > { %s132_s26 = ssub.s32 %s593_s21, %s650_s24  ;;  %p145_p0 = scmp.ne.s32.totalorder %s589_s20, %s585_s19 }
   0x6   : > { %p133_p1 = scmp.eq.s32.totalorder %s132_s26, 0  ;;  %p146_p2 = scmp.eq.s32.totalorder %s646_s22, 1 }
   0x7   : > { %p151_p3 = scmp.ne.s32.totalorder %s585_s19, %s581_s18  ;;  %p152_p4 = scmp.eq.s32.totalorder %s427_s23, 1 }
   0x8   : > { %s661_s27 = scalar_select %p133_p1, %s589_s20, %s135_s25  }
   0x9   : > { %p663_p5 = por %p146_p2, %p145_p0  ;;  %p667_p6 = por %p152_p4, %p151_p3 }
   0xa   : > { %p430_p7 = scmp.ge.s32.totalorder %s593_s21, 1  ;;  %p189_p8 = scmp.lt.s32.totalorder %s593_s21, 3 }
   0xc   : > { %p190_p9 = pnand %p430_p7, %p189_p8 }
   0xd   : > { %p216_p10 = scmp.lt.s32.totalorder (!%p190_p9), %s646_s22, 1  ;;  %s213_s16 = sand.u32 (!%p190_p9), 1, %s585_s19  }
   0xe   : > { %193 = sbr.rel (%p190_p9) target bundleno = 314 (0x13a), region = 40  ;;  %s475_s17 = sshll.u32 (!%p190_p9), %s646_s22, 3 }
   0xf   : > { %s431_s23 = sshll.u32 (!%p190_p9), %s213_s16, 3  ;;  %s363_s30 = scalar_lea.hbm (!%p190_p9), %s753_s5, %s475_s17 }
  0x10   : > { %s215_s8 = scalar_lea.vmem (!%p190_p9), [#allocation2], %s431_s23  ;;  %s367_s10 = sshll.u32 (!%p190_p9), %s363_s30, 4  ;;  %s368_s10 = int_to_ptr.hbm [resolvable:$true] %s367_s10 }
  0x11   : > { %s365_s9 = sshll.u32 (!%p190_p9), %s215_s8, 4  ;;  %s366_s9 = int_to_ptr.vmem [resolvable:$true] %s365_s9 }
  0x13   : > { %v479_v0 = vld [vmem:[%s749_s1 + $0x8] sm:$0xff]  ;;  %v487_v1 = vld [vmem:[%s751_s3 + $0x38] sm:$0xff]  ;;  %v478_v2 = vld [vmem:[%s749_s1] sm:$0xff]  ;;  %s217_s11 = scalar_select %p216_p10, %s646_s22, 1  ;;  %vm243_vm0 = vcmask 261120  }
  0x14   : > { %253 = vmatpush.bf16.msra.mxu0 %v479_v0  ;;  %338 = vmatpush.bf16.msra.mxu1 %v487_v1  ;;  %v486_v5 = vld [vmem:[%s751_s3 + $0x30] sm:$0xff]  ;;  %v485_v6 = vld [vmem:[%s751_s3 + $0x28] sm:$0xff]  ;;  %v484_v7 = vld [vmem:[%s751_s3 + $0x20] sm:$0xff]  ;;  %s353_s22 = scalar_lea.sflag [#allocation3], %s213_s16 }
  0x15   : > { %s432_s12 = sshll.u32 %s217_s11, 3  ;;  %v483_v8 = vld [vmem:[%s751_s3 + $0x18] sm:$0xff]  ;;  %v482_v9 = vld [vmem:[%s751_s3 + $0x10] sm:$0xff]  ;;  %v481_v10 = vld [vmem:[%s751_s3 + $0x8] sm:$0xff]  ;;  %s545_s11 = sshra.s32 %s368_s10, 4  ;;  %s546_s11 = int_to_ptr.hbm [resolvable:$true] %s545_s11 }
  0x16   : > { %s219_s15 = scalar_lea.vmem %s748_s0, %s432_s12  ;;  %v480_v11 = vld [vmem:[%s751_s3] sm:$0xff]  ;;  %s547_s12 = scalar_lea.hbm %s546_s11, 8 }
  0x17   : > { %v221_v3 = vld [vmem:[%s219_s15] sm:$0xff]  ;;  %p548_p11 = scmp.ne.s32.totalorder %s546_s11, %s547_s12  ;;  %s551_s15 = scalar_lea.hbm %s753_s5, 16 }
  0x18   : > { %254 = vmatpush.bf16.msra.mxu0 %v478_v2  ;;  %v222_v4 = vpack.c.bf16 %v221_v3, %v221_v3  ;;  %339 = vmatpush.bf16.msra.mxu1 %v486_v5  ;;  %v527_v12 = vld [vmem:[%s750_s2] ss:$0 sm:$0xff]  ;;  %p552_p0 = scmp.lt.s32.totalorder %s546_s11, %s753_s5  ;;  %p553_p1 = scmp.lt.s32.totalorder %s551_s15, %s547_s12 }
  0x19   : > { %v528_v26 = vld [vmem:[%s752_s4] ss:$0 sm:$0xff]  ;;  %p549_p12 = pnand %p548_p11, %p663_p5 }
  0x1a   : > { %p554_p2 = por %p553_p1, %p552_p0 }
  0x1b   : > { %441 = vmatmul.msk.bf16.vlgmr.msra.gmra.mxu0 %vm243_vm0, %v222_v4  ;;  %p550_p13 = pneg %p549_p12 }
  0x1c   : > { %340 = vmatpush.bf16.msra.mxu1 %v485_v6 }
  0x1d   : > { %p555_p3 = pnand %p554_p2, %p550_p13 }
  0x20   : > { %341 = vmatpush.bf16.msra.mxu1 %v484_v7 }
  0x24   : > { %342 = vmatpush.bf16.msra.mxu1 %v483_v8 }
  0x28   : > { %343 = vmatpush.bf16.msra.mxu1 %v482_v9 }
  0x2c   : > { %344 = vmatpush.bf16.msra.mxu1 %v481_v10 }
  0x30   : > { %345 = vmatpush.bf16.msra.mxu1 %v480_v11 }
  0x98   : > { %v256_v13 = vpop.f32.mrf.mxu0 }
  0x99   : > { %v257_v14 = vadd.f32 %v527_v12, %v256_v13 }
  0x9b   : > { %v260_v15 = vmul.f32 %v257_v14, %v257_v14 }
  0x9d   : > { %v261_v16 = vmul.f32 %v260_v15, %v257_v14 }
  0x9f   : > { %v262_v17 = vmul.f32 0.044715, %v261_v16 }
  0xa0   : > { %v258_v18 = vpop.f32.mrf.mxu0 }
  0xa1   : > { %v263_v19 = vadd.f32 %v262_v17, %v257_v14 }
  0xa3   : > { %v264_v20 = vmul.f32 0.7978846, %v263_v19 }
  0xa5   : > { %529 = vtanh.f32 %v264_v20 }
  0xab   : > { %v530_v21 = vpop.eup %529 }
  0xac   : > { %v266_v22 = vadd.f32 1.0, %v530_v21 }
  0xae   : > { %v267_v23 = vmul.f32 0.5, %v266_v22 }
  0xb0   : > { %v268_v24 = vmul.f32 %v267_v23, %v257_v14 }
  0xb2   : > { %v269_v25 = vpack.c.bf16 %v268_v24, %v268_v24 }
  0xb4   : > { %346 = vmatmul.bf16.vlgmr.msra.gmra.mxu1 %v269_v25 }
 0x131   : > { %v347_v27 = vpop.f32.mrf.mxu1 }
 0x132   : > { %v348_v28 = vadd.f32 %v528_v26, %v347_v27 }
 0x134   : > { %351 = vst.msk [vmem:[%s215_s8] sm:$0xff] %vm243_vm0, %v348_v28 }
 0x135   : > { %558 = shalt.err (!%p555_p3)
}
 0x136   : > { %488 = dma.vmem_to_hbm [thread:$0]  (%p663_p5), %s366_s9, 128, %s368_s10, %s353_s22  }
 0x139   : > { %v349_v29 = vpop.f32.mrf.mxu1 }
 0x13a PF: > { %p494_p4 = scmp.ge.s32.totalorder %s593_s21, 2  ;;  %s379_s16 = sand.u32 1, %s581_s18  }
 0x13b   : > { %s380_s25 = scalar_lea.sflag [#allocation3], %s379_s16 }
 0x13c   : > { %p491_p7 = pnand %p494_p4, %p667_p6 }
 0x13e   : > { %p492_p8 = pneg %p491_p7 }
 0x140   : > { %576 = dma.done.wait (%p492_p8), %s380_s25, 128  }
 0x141   : > { %578 = vsyncadd (%p492_p8), %s380_s25, 4294967168  ;;  %p15_p9 = scmp.ge.s32.totalorder %s650_s24, 4   ;;  %s756_s18 = smov %s585_s19 }
 0x142   : > { %s757_s19 = smov %s589_s20  ;;  %s758_s20 = smov %s661_s27 }
 0x143   : > { %s759_s21 = smov %s650_s24  ;;  %17 = sbr.rel (!%p15_p9) target bundleno = 3 (0x3), region = 75 }
 0x148   :  { %386 = vsyncpa [#allocation3], 1 }
 0x149   :  { %388 = vsyncpa [#allocation3 + $0x1], 1 }

// kernel: mlp_forward.1
= control target key start
LH: loop header
LB: loop body
LE: loop exit
PB: predicated region body
PF: predicated region fallthrough
CT: control target
= control target key end

     0   :  { %10 = vsyncpa [#allocation3], 0  ;;  %s748_s0 = inlined_call_operand.vmem [shape: f32[16,32], index: 0, kind: input, shape index: {}]   ;;  %s749_s1 = inlined_call_operand.vmem [shape: bf16[32,128], index: 1, kind: input, shape index: {}]   ;;  %s750_s2 = inlined_call_operand.vmem [shape: f32[1,128], index: 2, kind: input, shape index: {}]   ;;  %s751_s3 = inlined_call_operand.vmem [shape: bf16[128,32], index: 3, kind: input, shape index: {}]   ;;  %s752_s4 = inlined_call_operand.vmem [shape: f32[1,32], index: 4, kind: input, shape index: {}]   ;;  %s753_s5 = inlined_call_operand.hbm [shape: f32[16,32], index: 5, kind: output, shape index: {}]  }
   0x1   :  { %12 = vsyncpa [#allocation3 + $0x1], 0  ;;  %s625_s18 = smov 0   ;;  %s627_s19 = smov 0  }
   0x2   :  { %s629_s20 = smov 0   ;;  %s631_s21 = smov 0  }
   0x3 LB: > { %s646_s22 = sadd.s32 4294967295, %s593_s21   ;;  %s427_s23 = sadd.s32 4294967294, %s593_s21   ;;  %s593_s21 = sphi %s631_s21, %s759_s21   ;;  %s589_s20 = sphi %s629_s20, %s758_s20   ;;  %s585_s19 = sphi %s627_s19, %s757_s19   ;;  %s581_s18 = sphi %s625_s18, %s756_s18  }
   0x4   : > { %s650_s24 = sadd.s32 1, %s593_s21   ;;  %s135_s25 = sadd.s32 1, %s589_s20 }
   0x5   : > { %s132_s26 = ssub.s32 %s593_s21, %s650_s24  ;;  %p145_p0 = scmp.ne.s32.totalorder %s589_s20, %s585_s19 }
   0x6   : > { %p133_p1 = scmp.eq.s32.totalorder %s132_s26, 0  ;;  %p146_p2 = scmp.eq.s32.totalorder %s646_s22, 1 }
   0x7   : > { %p151_p3 = scmp.ne.s32.totalorder %s585_s19, %s581_s18  ;;  %p152_p4 = scmp.eq.s32.totalorder %s427_s23, 1 }
   0x8   : > { %s661_s27 = scalar_select %p133_p1, %s589_s20, %s135_s25  }
   0x9   : > { %p663_p5 = por %p146_p2, %p145_p0  ;;  %p667_p6 = por %p152_p4, %p151_p3 }
   0xa   : > { %p430_p7 = scmp.ge.s32.totalorder %s593_s21, 1  ;;  %p189_p8 = scmp.lt.s32.totalorder %s593_s21, 3 }
   0xc   : > { %p190_p9 = pnand %p430_p7, %p189_p8 }
   0xd   : > { %p216_p10 = scmp.lt.s32.totalorder (!%p190_p9), %s646_s22, 1  ;;  %s213_s16 = sand.u32 (!%p190_p9), 1, %s585_s19  }
   0xe   : > { %193 = sbr.rel (%p190_p9) target bundleno = 314 (0x13a), region = 40  ;;  %s475_s17 = sshll.u32 (!%p190_p9), %s646_s22, 3 }
   0xf   : > { %s431_s23 = sshll.u32 (!%p190_p9), %s213_s16, 3  ;;  %s363_s30 = scalar_lea.hbm (!%p190_p9), %s753_s5, %s475_s17 }
  0x10   : > { %s215_s8 = scalar_lea.vmem (!%p190_p9), [#allocation2], %s431_s23  ;;  %s367_s10 = sshll.u32 (!%p190_p9), %s363_s30, 4  ;;  %s368_s10 = int_to_ptr.hbm [resolvable:$true] %s367_s10 }
  0x11   : > { %s365_s9 = sshll.u32 (!%p190_p9), %s215_s8, 4  ;;  %s366_s9 = int_to_ptr.vmem [resolvable:$true] %s365_s9 }
  0x13   : > { %v479_v0 = vld [vmem:[%s749_s1 + $0x8] sm:$0xff]  ;;  %v487_v1 = vld [vmem:[%s751_s3 + $0x38] sm:$0xff]  ;;  %v478_v2 = vld [vmem:[%s749_s1] sm:$0xff]  ;;  %s217_s11 = scalar_select %p216_p10, %s646_s22, 1  ;;  %vm243_vm0 = vcmask 261120  }
  0x14   : > { %253 = vmatpush.bf16.msra.mxu0 %v479_v0  ;;  %338 = vmatpush.bf16.msra.mxu1 %v487_v1  ;;  %v486_v5 = vld [vmem:[%s751_s3 + $0x30] sm:$0xff]  ;;  %v485_v6 = vld [vmem:[%s751_s3 + $0x28] sm:$0xff]  ;;  %v484_v7 = vld [vmem:[%s751_s3 + $0x20] sm:$0xff]  ;;  %s353_s22 = scalar_lea.sflag [#allocation3], %s213_s16 }
  0x15   : > { %s432_s12 = sshll.u32 %s217_s11, 3  ;;  %v483_v8 = vld [vmem:[%s751_s3 + $0x18] sm:$0xff]  ;;  %v482_v9 = vld [vmem:[%s751_s3 + $0x10] sm:$0xff]  ;;  %v481_v10 = vld [vmem:[%s751_s3 + $0x8] sm:$0xff]  ;;  %s545_s11 = sshra.s32 %s368_s10, 4  ;;  %s546_s11 = int_to_ptr.hbm [resolvable:$true] %s545_s11 }
  0x16   : > { %s219_s15 = scalar_lea.vmem %s748_s0, %s432_s12  ;;  %v480_v11 = vld [vmem:[%s751_s3] sm:$0xff]  ;;  %s547_s12 = scalar_lea.hbm %s546_s11, 8 }
  0x17   : > { %v221_v3 = vld [vmem:[%s219_s15] sm:$0xff]  ;;  %p548_p11 = scmp.ne.s32.totalorder %s546_s11, %s547_s12  ;;  %s551_s15 = scalar_lea.hbm %s753_s5, 16 }
  0x18   : > { %254 = vmatpush.bf16.msra.mxu0 %v478_v2  ;;  %v222_v4 = vpack.c.bf16 %v221_v3, %v221_v3  ;;  %339 = vmatpush.bf16.msra.mxu1 %v486_v5  ;;  %v527_v12 = vld [vmem:[%s750_s2] ss:$0 sm:$0xff]  ;;  %p552_p0 = scmp.lt.s32.totalorder %s546_s11, %s753_s5  ;;  %p553_p1 = scmp.lt.s32.totalorder %s551_s15, %s547_s12 }
  0x19   : > { %v528_v26 = vld [vmem:[%s752_s4] ss:$0 sm:$0xff]  ;;  %p549_p12 = pnand %p548_p11, %p663_p5 }
  0x1a   : > { %p554_p2 = por %p553_p1, %p552_p0 }
  0x1b   : > { %441 = vmatmul.msk.bf16.vlgmr.msra.gmra.mxu0 %vm243_vm0, %v222_v4  ;;  %p550_p13 = pneg %p549_p12 }
  0x1c   : > { %340 = vmatpush.bf16.msra.mxu1 %v485_v6 }
  0x1d   : > { %p555_p3 = pnand %p554_p2, %p550_p13 }
  0x20   : > { %341 = vmatpush.bf16.msra.mxu1 %v484_v7 }
  0x24   : > { %342 = vmatpush.bf16.msra.mxu1 %v483_v8 }
  0x28   : > { %343 = vmatpush.bf16.msra.mxu1 %v482_v9 }
  0x2c   : > { %344 = vmatpush.bf16.msra.mxu1 %v481_v10 }
  0x30   : > { %345 = vmatpush.bf16.msra.mxu1 %v480_v11 }
  0x98   : > { %v256_v13 = vpop.f32.mrf.mxu0 }
  0x99   : > { %v257_v14 = vadd.f32 %v527_v12, %v256_v13 }
  0x9b   : > { %v260_v15 = vmul.f32 %v257_v14, %v257_v14 }
  0x9d   : > { %v261_v16 = vmul.f32 %v260_v15, %v257_v14 }
  0x9f   : > { %v262_v17 = vmul.f32 0.044715, %v261_v16 }
  0xa0   : > { %v258_v18 = vpop.f32.mrf.mxu0 }
  0xa1   : > { %v263_v19 = vadd.f32 %v262_v17, %v257_v14 }
  0xa3   : > { %v264_v20 = vmul.f32 0.7978846, %v263_v19 }
  0xa5   : > { %529 = vtanh.f32 %v264_v20 }
  0xab   : > { %v530_v21 = vpop.eup %529 }
  0xac   : > { %v266_v22 = vadd.f32 1.0, %v530_v21 }
  0xae   : > { %v267_v23 = vmul.f32 0.5, %v266_v22 }
  0xb0   : > { %v268_v24 = vmul.f32 %v267_v23, %v257_v14 }
  0xb2   : > { %v269_v25 = vpack.c.bf16 %v268_v24, %v268_v24 }
  0xb4   : > { %346 = vmatmul.bf16.vlgmr.msra.gmra.mxu1 %v269_v25 }
 0x131   : > { %v347_v27 = vpop.f32.mrf.mxu1 }
 0x132   : > { %v348_v28 = vadd.f32 %v528_v26, %v347_v27 }
 0x134   : > { %351 = vst.msk [vmem:[%s215_s8] sm:$0xff] %vm243_vm0, %v348_v28 }
 0x135   : > { %558 = shalt.err (!%p555_p3)
}
 0x136   : > { %488 = dma.vmem_to_hbm [thread:$0]  (%p663_p5), %s366_s9, 128, %s368_s10, %s353_s22  }
 0x139   : > { %v349_v29 = vpop.f32.mrf.mxu1 }
 0x13a PF: > { %p494_p4 = scmp.ge.s32.totalorder %s593_s21, 2  ;;  %s379_s16 = sand.u32 1, %s581_s18  }
 0x13b   : > { %s380_s25 = scalar_lea.sflag [#allocation3], %s379_s16 }
 0x13c   : > { %p491_p7 = pnand %p494_p4, %p667_p6 }
 0x13e   : > { %p492_p8 = pneg %p491_p7 }
 0x140   : > { %576 = dma.done.wait (%p492_p8), %s380_s25, 128  }
 0x141   : > { %578 = vsyncadd (%p492_p8), %s380_s25, 4294967168  ;;  %p15_p9 = scmp.ge.s32.totalorder %s650_s24, 4   ;;  %s756_s18 = smov %s585_s19 }
 0x142   : > { %s757_s19 = smov %s589_s20  ;;  %s758_s20 = smov %s661_s27 }
 0x143   : > { %s759_s21 = smov %s650_s24  ;;  %17 = sbr.rel (!%p15_p9) target bundleno = 3 (0x3), region = 75 }
 0x148   :  { %386 = vsyncpa [#allocation3], 1 }
 0x149   :  { %388 = vsyncpa [#allocation3 + $0x1], 1 }

</bundles_post_ra>
